<compile_context>
chip_gen: v7x
topology: tpu7x:2x2x1
jax: 0.10.0
libtpu: 0.0.40
codegen_flags: <defaults>
</compile_context>

<pallas_src>
import functools

import jax
import jax.numpy as jnp
from jax.experimental import pallas as pl
from jax.experimental.pallas import tpu as pltpu

EXPANSION = 4


def _round_up(x, m):
    return ((x + m - 1) // m) * m


# --------------------------- 1x1 conv kernels --------------------------------

def _mm_bias_kernel(x_ref, w_ref, b_ref, o_ref, *, relu):
    # bf16 x bf16 -> f32 accumulate on the MXU, + folded-BN bias, optional ReLU.
    acc = jnp.dot(x_ref[...], w_ref[...], preferred_element_type=jnp.float32)
    y = acc + b_ref[...]
    if relu:
        y = jnp.maximum(y, 0.0)
    o_ref[...] = y.astype(o_ref.dtype)


def _mm_bias_res_relu_kernel(x_ref, w_ref, b_ref, r_ref, o_ref):
    # Third conv of the block: matmul + bias + residual add + ReLU, fully fused.
    acc = jnp.dot(x_ref[...], w_ref[...], preferred_element_type=jnp.float32)
    y = acc + b_ref[...] + r_ref[...].astype(jnp.float32)
    o_ref[...] = jnp.maximum(y, 0.0).astype(o_ref.dtype)


def matmul_bias_act(x2d, w2d, bias, *, relu=False, residual=None,
                    out_dtype=jnp.bfloat16):
    """(M,K)bf16 @ (K,C)bf16 + bias [+ residual], optional ReLU. f32 accumulate."""
    M, K = x2d.shape
    C = w2d.shape[1]
    tm = min(256, _round_up(M, 8))
    if C % 256 == 0:
        tn = 256
    elif C % 128 == 0:
        tn = 128
    else:
        tn = C                      # small C: full (lane-padded) channel block
    grid = (pl.cdiv(M, tm), C // tn)
    bias2d = bias.reshape(1, C).astype(jnp.float32)

    in_specs = [
        pl.BlockSpec((tm, K), lambda i, j: (i, 0)),
        pl.BlockSpec((K, tn), lambda i, j: (0, j)),   # weight block stays resident
        pl.BlockSpec((1, tn), lambda i, j: (0, j)),
    ]
    operands = [x2d, w2d, bias2d]
    if residual is None:
        kernel = functools.partial(_mm_bias_kernel, relu=relu)
    else:
        kernel = _mm_bias_res_relu_kernel
        in_specs.append(pl.BlockSpec((tm, tn), lambda i, j: (i, j)))
        operands.append(residual)

    return pl.pallas_call(
        kernel,
        out_shape=jax.ShapeDtypeStruct((M, C), out_dtype),
        grid=grid,
        in_specs=in_specs,
        out_specs=pl.BlockSpec((tm, tn), lambda i, j: (i, j)),
        compiler_params=pltpu.CompilerParams(
            dimension_semantics=("parallel", "parallel")),
    )(*operands)


def conv1x1_bn_act(x_nhwc, w, bias, *, stride=1, relu=False, residual=None,
                   out_dtype=jnp.bfloat16):
    """1x1 conv (stride via spatial subsample) + folded BN + opt. residual/ReLU."""
    if stride > 1:
        x_nhwc = x_nhwc[:, ::stride, ::stride, :]
    N, H, W, Cin = x_nhwc.shape
    Cout = w.shape[-1]
    x2d = x_nhwc.reshape(N * H * W, Cin)
    w2d = w.reshape(Cin, Cout)
    r2d = None if residual is None else residual.reshape(N * H * W, Cout)
    y2d = matmul_bias_act(x2d, w2d, bias, relu=relu, residual=r2d,
                          out_dtype=out_dtype)
    return y2d.reshape(N, H, W, Cout)


# --------------------------- 3x3 conv kernels --------------------------------
# One output spatial row per (n, h) grid cell; the kernel-row tap ki is the
# innermost 'arbitrary' reduction axis accumulating into an f32 VMEM scratch.

def _conv3x3_row_s1_kernel(x_ref, w_ref, b_ref, o_ref, acc_ref, *, wo):
    ki = pl.program_id(2)

    @pl.when(ki == 0)
    def _init():
        acc_ref[...] = jnp.zeros_like(acc_ref)

    # x_ref block: one padded input row (1, 1, W+2, Cin); three width taps.
    contrib = jnp.dot(x_ref[0, 0, 0:wo, :], w_ref[0, 0],
                      preferred_element_type=jnp.float32)
    contrib += jnp.dot(x_ref[0, 0, 1:1 + wo, :], w_ref[0, 1],
                       preferred_element_type=jnp.float32)
    contrib += jnp.dot(x_ref[0, 0, 2:2 + wo, :], w_ref[0, 2],
                       preferred_element_type=jnp.float32)
    acc_ref[...] += contrib

    @pl.when(ki == pl.num_programs(2) - 1)
    def _finish():
        y = jnp.maximum(acc_ref[...] + b_ref[...], 0.0)
        o_ref[0, 0] = y.astype(o_ref.dtype)


def _conv3x3_row_s2_kernel(xe_ref, xo_ref, w_ref, b_ref, o_ref, acc_ref, *, wo):
    ki = pl.program_id(2)

    @pl.when(ki == 0)
    def _init():
        acc_ref[...] = jnp.zeros_like(acc_ref)

    # Stride-2 width taps from the even/odd padded-column pre-split:
    #   kj=0 -> even[0:wo], kj=1 -> odd[0:wo], kj=2 -> even[1:1+wo]
    contrib = jnp.dot(xe_ref[0, 0, 0:wo, :], w_ref[0, 0],
                      preferred_element_type=jnp.float32)
    contrib += jnp.dot(xo_ref[0, 0, 0:wo, :], w_ref[0, 1],
                       preferred_element_type=jnp.float32)
    contrib += jnp.dot(xe_ref[0, 0, 1:1 + wo, :], w_ref[0, 2],
                       preferred_element_type=jnp.float32)
    acc_ref[...] += contrib

    @pl.when(ki == pl.num_programs(2) - 1)
    def _finish():
        y = jnp.maximum(acc_ref[...] + b_ref[...], 0.0)
        o_ref[0, 0] = y.astype(o_ref.dtype)


def conv3x3_bn_relu(x_nhwc, w, bias, *, stride):
    """3x3 conv (pad=1) + folded BN + ReLU, without HBM im2col materialization."""
    N, H, W, Cin = x_nhwc.shape
    Cout = w.shape[-1]
    pad = 1
    Ho = (H + 2 * pad - 3) // stride + 1
    Wo = (W + 2 * pad - 3) // stride + 1
    xp = jnp.pad(x_nhwc, ((0, 0), (pad, pad), (pad, pad), (0, 0)))
    bias2d = bias.reshape(1, Cout).astype(jnp.float32)

    w_spec = pl.BlockSpec((1, 3, Cin, Cout), lambda n, h, ki: (ki, 0, 0, 0))
    b_spec = pl.BlockSpec((1, Cout), lambda n, h, ki: (0, 0))
    out_spec = pl.BlockSpec((1, 1, Wo, Cout), lambda n, h, ki: (n, h, 0, 0))

    if stride == 1:
        kernel = functools.partial(_conv3x3_row_s1_kernel, wo=Wo)
        in_specs = [
            pl.BlockSpec((1, 1, W + 2 * pad, Cin),
                         lambda n, h, ki: (n, h + ki, 0, 0)),
            w_spec, b_spec,
        ]
        operands = (xp, w, bias2d)
    elif stride == 2:
        if H % 2 or W % 2:
            raise NotImplementedError("stride-2 3x3 conv expects even H, W")
        xe = xp[:, :, 0::2, :]   # even padded columns
        xo = xp[:, :, 1::2, :]   # odd  padded columns
        kernel = functools.partial(_conv3x3_row_s2_kernel, wo=Wo)
        in_specs = [
            pl.BlockSpec((1, 1, xe.shape[2], Cin),
                         lambda n, h, ki: (n, 2 * h + ki, 0, 0)),
            pl.BlockSpec((1, 1, xo.shape[2], Cin),
                         lambda n, h, ki: (n, 2 * h + ki, 0, 0)),
            w_spec, b_spec,
        ]
        operands = (xe, xo, w, bias2d)
    else:
        # TODO(synk): general-stride 3x3 conv (ResNet only uses stride 1 or 2).
        raise NotImplementedError("3x3 conv stride must be 1 or 2")

    return pl.pallas_call(
        kernel,
        out_shape=jax.ShapeDtypeStruct((N, Ho, Wo, Cout), jnp.bfloat16),
        grid=(N, Ho, 3),
        in_specs=in_specs,
        out_specs=out_spec,
        scratch_shapes=[pltpu.VMEM((Wo, Cout), jnp.float32)],
        compiler_params=pltpu.CompilerParams(
            dimension_semantics=("parallel", "parallel", "arbitrary")),
    )(*operands)


# ------------------------------- parameters ----------------------------------

def _fold_bn(w_hwio, gamma, beta, mean, var, eps=1e-5):
    """Fold inference BatchNorm into the conv: scale -> weights, bias separate."""
    scale = gamma / jnp.sqrt(var + eps)
    bias = beta - mean * scale
    return (w_hwio * scale).astype(jnp.bfloat16), bias.astype(jnp.float32)


def init_bottleneck_params(key, in_channels, planes, stride):
    keys = iter(jax.random.split(key, 16))

    def conv_w(k, cin, cout):
        return (jax.random.normal(next(keys), (k, k, cin, cout), jnp.float32)
                * (1.0 / float(k * k * cin) ** 0.5))

    def bn(c):
        k1, k2, k3, k4 = jax.random.split(next(keys), 4)
        gamma = 1.0 + 0.1 * jax.random.normal(k1, (c,), jnp.float32)
        beta = 0.1 * jax.random.normal(k2, (c,), jnp.float32)
        mean = 0.1 * jax.random.normal(k3, (c,), jnp.float32)
        var = 1.0 + jnp.abs(jax.random.normal(k4, (c,), jnp.float32))
        return gamma, beta, mean, var

    p = {}
    p["w1"], p["b1"] = _fold_bn(conv_w(1, in_channels, planes), *bn(planes))
    p["w2"], p["b2"] = _fold_bn(conv_w(3, planes, planes), *bn(planes))
    cexp = planes * EXPANSION
    p["w3"], p["b3"] = _fold_bn(conv_w(1, planes, cexp), *bn(cexp))
    if stride != 1 or in_channels != cexp:
        # standard ResNet downsample shortcut: 1x1 conv (stride) + BN
        p["ws"], p["bs"] = _fold_bn(conv_w(1, in_channels, cexp), *bn(cexp))
    return p


# --------------------------------- forward -----------------------------------

def bottleneck_forward(params, x_nchw, *, stride):
    """Bottleneck.forward: NCHW in -> NCHW out (matches the PyTorch module)."""
    x = jnp.transpose(x_nchw, (0, 2, 3, 1)).astype(jnp.bfloat16)  # NHWC bf16

    out = conv1x1_bn_act(x, params["w1"], params["b1"], relu=True)
    out = conv3x3_bn_relu(out, params["w2"], params["b2"], stride=stride)

    if "ws" in params:
        identity = conv1x1_bn_act(x, params["ws"], params["bs"],
                                  stride=stride, relu=False)
    else:
        identity = x     # stride 1 and matching channels

    # conv3 + BN + residual add + ReLU, fused in one kernel; final output in f32.
    y = conv1x1_bn_act(out, params["w3"], params["b3"],
                       residual=identity, out_dtype=jnp.float32)
    return jnp.transpose(y, (0, 3, 1, 2))


# ------------------------------- reference -----------------------------------

def _reference_bottleneck(params, x_nchw, *, stride):
    f32 = jnp.float32

    def rb(v):  # emulate the kernels' bf16 inter-stage storage
        return v.astype(jnp.bfloat16).astype(f32)

    def conv(v, w, b, s, p):
        y = jax.lax.conv_general_dilated(
            v, w.astype(f32), (s, s), [(p, p), (p, p)],
            dimension_numbers=("NHWC", "HWIO", "NHWC"),
            precision=jax.lax.Precision.HIGHEST)
        return y + b.reshape(1, 1, 1, -1)

    x = rb(jnp.transpose(x_nchw, (0, 2, 3, 1)).astype(f32))
    out = rb(jnp.maximum(conv(x, params["w1"], params["b1"], 1, 0), 0.0))
    out = rb(jnp.maximum(conv(out, params["w2"], params["b2"], stride, 1), 0.0))
    if "ws" in params:
        identity = rb(conv(x, params["ws"], params["bs"], stride, 0))
    else:
        identity = x
    y = jnp.maximum(conv(out, params["w3"], params["b3"], 1, 0) + identity, 0.0)
    return jnp.transpose(y, (0, 3, 1, 2))


# ----------------------------------- main -------------------------------------

if __name__ == "__main__":
    key = jax.random.PRNGKey(0)
    k_param, k_x = jax.random.split(key)

    N, Cin, H, W = 2, 4, 16, 16
    planes, stride = 8, 2       # downsampling Bottleneck with conv shortcut

    params = init_bottleneck_params(k_param, Cin, planes, stride)
    x = jax.random.normal(k_x, (N, Cin, H, W), jnp.float32)   # NCHW

    fwd = jax.jit(functools.partial(bottleneck_forward, stride=stride))
    y = jax.block_until_ready(fwd(params, x))

    assert y.shape == (N, planes * EXPANSION, H // stride, W // stride), y.shape
    assert bool(jnp.all(jnp.isfinite(y)))

    y_ref = _reference_bottleneck(params, x, stride=stride)
    err = float(jnp.max(jnp.abs(y - y_ref)))
    ref_scale = float(jnp.max(jnp.abs(y_ref))) + 1.0
    assert err <= 2e-2 * ref_scale, (err, ref_scale)

    print("KERNEL_OK")
</pallas_src>

<mosaic_0001>
module attributes {stable_mosaic.version = 11 : i64} {
  func.func @_mm_bias_kernel(%arg0: i32, %arg1: i32, %arg2: memref<128x4xbf16, #tpu.memory_space<vmem>>, %arg3: memref<4x32xbf16, #tpu.memory_space<vmem>>, %arg4: memref<1x32xf32, #tpu.memory_space<vmem>>, %arg5: memref<128x32xbf16, #tpu.memory_space<vmem>>) attributes {dimension_semantics = [#tpu.dimension_semantics<parallel>, #tpu.dimension_semantics<parallel>], iteration_bounds = array<i64: 1, 1>, scalar_prefetch = 0 : i64, scratch_operands = 0 : i64, tpu.core_type = #tpu.core_type<tc>, window_params = [{transform_indices = @transform_0, window_bounds = array<i64: 128, 4>}, {transform_indices = @transform_1, window_bounds = array<i64: 4, 32>}, {transform_indices = @transform_2, window_bounds = array<i64: 1, 32>}, {transform_indices = @transform_3, window_bounds = array<i64: 128, 32>}]} {
    %c0 = arith.constant 0 : index
    %c0_0 = arith.constant 0 : index
    %0 = vector.load %arg2[%c0, %c0_0] : memref<128x4xbf16, #tpu.memory_space<vmem>>, vector<128x4xbf16>
    %c0_1 = arith.constant 0 : index
    %c0_2 = arith.constant 0 : index
    %1 = vector.load %arg3[%c0_1, %c0_2] : memref<4x32xbf16, #tpu.memory_space<vmem>>, vector<4x32xbf16>
    %cst = arith.constant dense<0.000000e+00> : vector<128x32xf32>
    %2 = tpu.matmul %0, %1, %cst {dimension_numbers = #tpu.dot_dimension_numbers<[1], [0], [0], [1], [0, 0, 1, 1], [], []>} : vector<128x4xbf16>, vector<4x32xbf16>, vector<128x32xf32> -> vector<128x32xf32>
    %c0_3 = arith.constant 0 : index
    %c0_4 = arith.constant 0 : index
    %3 = vector.load %arg4[%c0_3, %c0_4] : memref<1x32xf32, #tpu.memory_space<vmem>>, vector<1x32xf32>
    %4 = vector.broadcast %3 : vector<1x32xf32> to vector<128x32xf32>
    %5 = arith.addf %2, %4 : vector<128x32xf32>
    %6 = arith.truncf %5 : vector<128x32xf32> to vector<128x32xbf16>
    %c0_5 = arith.constant 0 : index
    %c0_6 = arith.constant 0 : index
    %7 = vector.load %arg5[%c0_5, %c0_6] : memref<128x32xbf16, #tpu.memory_space<vmem>>, vector<128x32xbf16>
    tpu.vector_store %arg5[%c0_5, %c0_6], %6 {strides = array<i32>} : memref<128x32xbf16, #tpu.memory_space<vmem>>, vector<128x32xbf16>,
    return
  }
  func.func @transform_0(%arg0: i32, %arg1: i32) -> (i32, i32) {
    %c0_i32 = arith.constant 0 : i32
    %c0_i32_0 = arith.constant 0 : i32
    return %arg0, %c0_i32 : i32, i32
  }
  func.func @transform_1(%arg0: i32, %arg1: i32) -> (i32, i32) {
    %c0_i32 = arith.constant 0 : i32
    %c0_i32_0 = arith.constant 0 : i32
    return %c0_i32, %arg1 : i32, i32
  }
  func.func @transform_2(%arg0: i32, %arg1: i32) -> (i32, i32) {
    %c0_i32 = arith.constant 0 : i32
    %c0_i32_0 = arith.constant 0 : i32
    return %c0_i32, %arg1 : i32, i32
  }
  func.func @transform_3(%arg0: i32, %arg1: i32) -> (i32, i32) {
    %c0_i32 = arith.constant 0 : i32
    return %arg0, %arg1 : i32, i32
  }
}

module attributes {stable_mosaic.version = 11 : i64} {
  func.func @_mm_bias_kernel(%arg0: i32, %arg1: i32, %arg2: memref<256x4xbf16, #tpu.memory_space<vmem>>, %arg3: memref<4x8xbf16, #tpu.memory_space<vmem>>, %arg4: memref<1x8xf32, #tpu.memory_space<vmem>>, %arg5: memref<256x8xbf16, #tpu.memory_space<vmem>>) attributes {dimension_semantics = [#tpu.dimension_semantics<parallel>, #tpu.dimension_semantics<parallel>], iteration_bounds = array<i64: 2, 1>, scalar_prefetch = 0 : i64, scratch_operands = 0 : i64, tpu.core_type = #tpu.core_type<tc>, window_params = [{transform_indices = @transform_0, window_bounds = array<i64: 256, 4>}, {transform_indices = @transform_1, window_bounds = array<i64: 4, 8>}, {transform_indices = @transform_2, window_bounds = array<i64: 1, 8>}, {transform_indices = @transform_3, window_bounds = array<i64: 256, 8>}]} {
    %c0 = arith.constant 0 : index
    %c0_0 = arith.constant 0 : index
    %0 = vector.load %arg2[%c0, %c0_0] : memref<256x4xbf16, #tpu.memory_space<vmem>>, vector<256x4xbf16>
    %c0_1 = arith.constant 0 : index
    %c0_2 = arith.constant 0 : index
    %1 = vector.load %arg3[%c0_1, %c0_2] : memref<4x8xbf16, #tpu.memory_space<vmem>>, vector<4x8xbf16>
    %cst = arith.constant dense<0.000000e+00> : vector<256x8xf32>
    %2 = tpu.matmul %0, %1, %cst {dimension_numbers = #tpu.dot_dimension_numbers<[1], [0], [0], [1], [0, 0, 1, 1], [], []>} : vector<256x4xbf16>, vector<4x8xbf16>, vector<256x8xf32> -> vector<256x8xf32>
    %c0_3 = arith.constant 0 : index
    %c0_4 = arith.constant 0 : index
    %3 = vector.load %arg4[%c0_3, %c0_4] : memref<1x8xf32, #tpu.memory_space<vmem>>, vector<1x8xf32>
    %4 = vector.broadcast %3 : vector<1x8xf32> to vector<256x8xf32>
    %5 = arith.addf %2, %4 : vector<256x8xf32>
    %cst_5 = arith.constant 0.000000e+00 : f32
    %6 = vector.broadcast %cst_5 : f32 to vector<256x8xf32>
    %7 = arith.maximumf %5, %6 : vector<256x8xf32>
    %8 = arith.truncf %7 : vector<256x8xf32> to vector<256x8xbf16>
    %c0_6 = arith.constant 0 : index
    %c0_7 = arith.constant 0 : index
    %9 = vector.load %arg5[%c0_6, %c0_7] : memref<256x8xbf16, #tpu.memory_space<vmem>>, vector<256x8xbf16>
    tpu.vector_store %arg5[%c0_6, %c0_7], %8 {strides = array<i32>} : memref<256x8xbf16, #tpu.memory_space<vmem>>, vector<256x8xbf16>,
    return
  }
  func.func @transform_0(%arg0: i32, %arg1: i32) -> (i32, i32) {
    %c0_i32 = arith.constant 0 : i32
    %c0_i32_0 = arith.constant 0 : i32
    return %arg0, %c0_i32 : i32, i32
  }
  func.func @transform_1(%arg0: i32, %arg1: i32) -> (i32, i32) {
    %c0_i32 = arith.constant 0 : i32
    %c0_i32_0 = arith.constant 0 : i32
    return %c0_i32, %arg1 : i32, i32
  }
  func.func @transform_2(%arg0: i32, %arg1: i32) -> (i32, i32) {
    %c0_i32 = arith.constant 0 : i32
    %c0_i32_0 = arith.constant 0 : i32
    return %c0_i32, %arg1 : i32, i32
  }
  func.func @transform_3(%arg0: i32, %arg1: i32) -> (i32, i32) {
    %c0_i32 = arith.constant 0 : i32
    return %arg0, %arg1 : i32, i32
  }
}

module attributes {stable_mosaic.version = 11 : i64} {
  func.func @_mm_bias_res_relu_kernel(%arg0: i32, %arg1: i32, %arg2: memref<128x8xbf16, #tpu.memory_space<vmem>>, %arg3: memref<8x32xbf16, #tpu.memory_space<vmem>>, %arg4: memref<1x32xf32, #tpu.memory_space<vmem>>, %arg5: memref<128x32xbf16, #tpu.memory_space<vmem>>, %arg6: memref<128x32xf32, #tpu.memory_space<vmem>>) attributes {dimension_semantics = [#tpu.dimension_semantics<parallel>, #tpu.dimension_semantics<parallel>], iteration_bounds = array<i64: 1, 1>, scalar_prefetch = 0 : i64, scratch_operands = 0 : i64, tpu.core_type = #tpu.core_type<tc>, window_params = [{transform_indices = @transform_0, window_bounds = array<i64: 128, 8>}, {transform_indices = @transform_1, window_bounds = array<i64: 8, 32>}, {transform_indices = @transform_2, window_bounds = array<i64: 1, 32>}, {transform_indices = @transform_3, window_bounds = array<i64: 128, 32>}, {transform_indices = @transform_4, window_bounds = array<i64: 128, 32>}]} {
    %c0 = arith.constant 0 : index
    %c0_0 = arith.constant 0 : index
    %0 = vector.load %arg2[%c0, %c0_0] : memref<128x8xbf16, #tpu.memory_space<vmem>>, vector<128x8xbf16>
    %c0_1 = arith.constant 0 : index
    %c0_2 = arith.constant 0 : index
    %1 = vector.load %arg3[%c0_1, %c0_2] : memref<8x32xbf16, #tpu.memory_space<vmem>>, vector<8x32xbf16>
    %cst = arith.constant dense<0.000000e+00> : vector<128x32xf32>
    %2 = tpu.matmul %0, %1, %cst {dimension_numbers = #tpu.dot_dimension_numbers<[1], [0], [0], [1], [0, 0, 1, 1], [], []>} : vector<128x8xbf16>, vector<8x32xbf16>, vector<128x32xf32> -> vector<128x32xf32>
    %c0_3 = arith.constant 0 : index
    %c0_4 = arith.constant 0 : index
    %3 = vector.load %arg4[%c0_3, %c0_4] : memref<1x32xf32, #tpu.memory_space<vmem>>, vector<1x32xf32>
    %4 = vector.broadcast %3 : vector<1x32xf32> to vector<128x32xf32>
    %5 = arith.addf %2, %4 : vector<128x32xf32>
    %c0_5 = arith.constant 0 : index
    %c0_6 = arith.constant 0 : index
    %6 = vector.load %arg5[%c0_5, %c0_6] : memref<128x32xbf16, #tpu.memory_space<vmem>>, vector<128x32xbf16>
    %7 = arith.extf %6 : vector<128x32xbf16> to vector<128x32xf32>
    %8 = arith.addf %5, %7 : vector<128x32xf32>
    %cst_7 = arith.constant 0.000000e+00 : f32
    %9 = vector.broadcast %cst_7 : f32 to vector<128x32xf32>
    %10 = arith.maximumf %8, %9 : vector<128x32xf32>
    %c0_8 = arith.constant 0 : index
    %c0_9 = arith.constant 0 : index
    %11 = vector.load %arg6[%c0_8, %c0_9] : memref<128x32xf32, #tpu.memory_space<vmem>>, vector<128x32xf32>
    tpu.vector_store %arg6[%c0_8, %c0_9], %10 {strides = array<i32>} : memref<128x32xf32, #tpu.memory_space<vmem>>, vector<128x32xf32>,
    return
  }
  func.func @transform_0(%arg0: i32, %arg1: i32) -> (i32, i32) {
    %c0_i32 = arith.constant 0 : i32
    %c0_i32_0 = arith.constant 0 : i32
    return %arg0, %c0_i32 : i32, i32
  }
  func.func @transform_1(%arg0: i32, %arg1: i32) -> (i32, i32) {
    %c0_i32 = arith.constant 0 : i32
    %c0_i32_0 = arith.constant 0 : i32
    return %c0_i32, %arg1 : i32, i32
  }
  func.func @transform_2(%arg0: i32, %arg1: i32) -> (i32, i32) {
    %c0_i32 = arith.constant 0 : i32
    %c0_i32_0 = arith.constant 0 : i32
    return %c0_i32, %arg1 : i32, i32
  }
  func.func @transform_3(%arg0: i32, %arg1: i32) -> (i32, i32) {
    %c0_i32 = arith.constant 0 : i32
    return %arg0, %arg1 : i32, i32
  }
  func.func @transform_4(%arg0: i32, %arg1: i32) -> (i32, i32) {
    %c0_i32 = arith.constant 0 : i32
    return %arg0, %arg1 : i32, i32
  }
}

module attributes {stable_mosaic.version = 11 : i64} {
  func.func @_conv3x3_row_s2_kernel(%arg0: i32, %arg1: i32, %arg2: i32, %arg3: memref<1x1x9x8xbf16, #tpu.memory_space<vmem>>, %arg4: memref<1x1x9x8xbf16, #tpu.memory_space<vmem>>, %arg5: memref<1x3x8x8xbf16, #tpu.memory_space<vmem>>, %arg6: memref<1x8xf32, #tpu.memory_space<vmem>>, %arg7: memref<1x1x8x8xbf16, #tpu.memory_space<vmem>>, %arg8: memref<8x8xf32, #tpu.memory_space<vmem>>) attributes {dimension_semantics = [#tpu.dimension_semantics<parallel>, #tpu.dimension_semantics<parallel>, #tpu.dimension_semantics<arbitrary>], iteration_bounds = array<i64: 2, 8, 3>, scalar_prefetch = 0 : i64, scratch_operands = 1 : i64, tpu.core_type = #tpu.core_type<tc>, window_params = [{transform_indices = @transform_0, window_bounds = array<i64: 1, 1, 9, 8>}, {transform_indices = @transform_1, window_bounds = array<i64: 1, 1, 9, 8>}, {transform_indices = @transform_2, window_bounds = array<i64: 1, 3, 8, 8>}, {pipeline_mode = #tpu.pipeline_mode<synchronous>, transform_indices = @transform_3, window_bounds = array<i64: 1, 8>}, {transform_indices = @transform_4, window_bounds = array<i64: 1, 1, 8, 8>}]} {
    %c0_i32 = arith.constant 0 : i32
    %0 = arith.cmpi eq, %arg2, %c0_i32 : i32
    %1 = arith.extui %0 : i1 to i32
    %c0_i32_0 = arith.constant 0 : i32
    %2 = arith.cmpi ne, %1, %c0_i32_0 : i32
    scf.if %2 {
      %cst_29 = arith.constant 0.000000e+00 : f32
      %26 = vector.broadcast %cst_29 : f32 to vector<8x8xf32>
      %c0_30 = arith.constant 0 : index
      %c0_31 = arith.constant 0 : index
      %27 = vector.load %arg8[%c0_30, %c0_31] : memref<8x8xf32, #tpu.memory_space<vmem>>, vector<8x8xf32>
      tpu.vector_store %arg8[%c0_30, %c0_31], %26 {strides = array<i32>} : memref<8x8xf32, #tpu.memory_space<vmem>>, vector<8x8xf32>,
    } else {
    }
    %c0 = arith.constant 0 : index
    %c0_1 = arith.constant 0 : index
    %c0_2 = arith.constant 0 : index
    %c0_3 = arith.constant 0 : index
    %3 = vector.load %arg3[%c0, %c0_1, %c0_2, %c0_3] : memref<1x1x9x8xbf16, #tpu.memory_space<vmem>>, vector<1x1x8x8xbf16>
    %4 = vector.shape_cast %3 : vector<1x1x8x8xbf16> to vector<8x8xbf16>
    %c0_4 = arith.constant 0 : index
    %c0_5 = arith.constant 0 : index
    %c0_6 = arith.constant 0 : index
    %c0_7 = arith.constant 0 : index
    %5 = vector.load %arg5[%c0_4, %c0_5, %c0_6, %c0_7] : memref<1x3x8x8xbf16, #tpu.memory_space<vmem>>, vector<1x1x8x8xbf16>
    %6 = vector.shape_cast %5 : vector<1x1x8x8xbf16> to vector<8x8xbf16>
    %cst = arith.constant dense<0.000000e+00> : vector<8x8xf32>
    %7 = tpu.matmul %4, %6, %cst {dimension_numbers = #tpu.dot_dimension_numbers<[1], [0], [0], [1], [0, 0, 1, 1], [], []>} : vector<8x8xbf16>, vector<8x8xbf16>, vector<8x8xf32> -> vector<8x8xf32>
    %c0_8 = arith.constant 0 : index
    %c0_9 = arith.constant 0 : index
    %c0_10 = arith.constant 0 : index
    %c0_11 = arith.constant 0 : index
    %8 = vector.load %arg4[%c0_8, %c0_9, %c0_10, %c0_11] : memref<1x1x9x8xbf16, #tpu.memory_space<vmem>>, vector<1x1x8x8xbf16>
    %9 = vector.shape_cast %8 : vector<1x1x8x8xbf16> to vector<8x8xbf16>
    %c0_12 = arith.constant 0 : index
    %c1 = arith.constant 1 : index
    %c0_13 = arith.constant 0 : index
    %c0_14 = arith.constant 0 : index
    %10 = vector.load %arg5[%c0_12, %c1, %c0_13, %c0_14] : memref<1x3x8x8xbf16, #tpu.memory_space<vmem>>, vector<1x1x8x8xbf16>
    %11 = vector.shape_cast %10 : vector<1x1x8x8xbf16> to vector<8x8xbf16>
    %cst_15 = arith.constant dense<0.000000e+00> : vector<8x8xf32>
    %12 = tpu.matmul %9, %11, %cst_15 {dimension_numbers = #tpu.dot_dimension_numbers<[1], [0], [0], [1], [0, 0, 1, 1], [], []>} : vector<8x8xbf16>, vector<8x8xbf16>, vector<8x8xf32> -> vector<8x8xf32>
    %13 = arith.addf %7, %12 : vector<8x8xf32>
    %c0_16 = arith.constant 0 : index
    %c0_17 = arith.constant 0 : index
    %c1_18 = arith.constant 1 : index
    %c0_19 = arith.constant 0 : index
    %14 = vector.load %arg3[%c0_16, %c0_17, %c1_18, %c0_19] : memref<1x1x9x8xbf16, #tpu.memory_space<vmem>>, vector<1x1x8x8xbf16>
    %15 = vector.shape_cast %14 : vector<1x1x8x8xbf16> to vector<8x8xbf16>
    %c0_20 = arith.constant 0 : index
    %c2 = arith.constant 2 : index
    %c0_21 = arith.constant 0 : index
    %c0_22 = arith.constant 0 : index
    %16 = vector.load %arg5[%c0_20, %c2, %c0_21, %c0_22] : memref<1x3x8x8xbf16, #tpu.memory_space<vmem>>, vector<1x1x8x8xbf16>
    %17 = vector.shape_cast %16 : vector<1x1x8x8xbf16> to vector<8x8xbf16>
    %cst_23 = arith.constant dense<0.000000e+00> : vector<8x8xf32>
    %18 = tpu.matmul %15, %17, %cst_23 {dimension_numbers = #tpu.dot_dimension_numbers<[1], [0], [0], [1], [0, 0, 1, 1], [], []>} : vector<8x8xbf16>, vector<8x8xbf16>, vector<8x8xf32> -> vector<8x8xf32>
    %19 = arith.addf %13, %18 : vector<8x8xf32>
    %c0_24 = arith.constant 0 : index
    %c0_25 = arith.constant 0 : index
    %20 = vector.load %arg8[%c0_24, %c0_25] : memref<8x8xf32, #tpu.memory_space<vmem>>, vector<8x8xf32>
    %21 = arith.addf %20, %19 : vector<8x8xf32>
    %c0_26 = arith.constant 0 : index
    %c0_27 = arith.constant 0 : index
    %22 = vector.load %arg8[%c0_26, %c0_27] : memref<8x8xf32, #tpu.memory_space<vmem>>, vector<8x8xf32>
    tpu.vector_store %arg8[%c0_26, %c0_27], %21 {strides = array<i32>} : memref<8x8xf32, #tpu.memory_space<vmem>>, vector<8x8xf32>,
    %c2_i32 = arith.constant 2 : i32
    %23 = arith.cmpi eq, %arg2, %c2_i32 : i32
    %24 = arith.extui %23 : i1 to i32
    %c0_i32_28 = arith.constant 0 : i32
    %25 = arith.cmpi ne, %24, %c0_i32_28 : i32
    scf.if %25 {
      %c0_29 = arith.constant 0 : index
      %c0_30 = arith.constant 0 : index
      %26 = vector.load %arg8[%c0_29, %c0_30] : memref<8x8xf32, #tpu.memory_space<vmem>>, vector<8x8xf32>
      %c0_31 = arith.constant 0 : index
      %c0_32 = arith.constant 0 : index
      %27 = vector.load %arg6[%c0_31, %c0_32] : memref<1x8xf32, #tpu.memory_space<vmem>>, vector<1x8xf32>
      %28 = vector.broadcast %27 : vector<1x8xf32> to vector<8x8xf32>
      %29 = arith.addf %26, %28 : vector<8x8xf32>
      %cst_33 = arith.constant 0.000000e+00 : f32
      %30 = vector.broadcast %cst_33 : f32 to vector<8x8xf32>
      %31 = arith.maximumf %29, %30 : vector<8x8xf32>
      %32 = arith.truncf %31 : vector<8x8xf32> to vector<8x8xbf16>
      %c0_34 = arith.constant 0 : index
      %c0_35 = arith.constant 0 : index
      %c0_36 = arith.constant 0 : index
      %c0_37 = arith.constant 0 : index
      %33 = vector.load %arg7[%c0_34, %c0_35, %c0_36, %c0_37] : memref<1x1x8x8xbf16, #tpu.memory_space<vmem>>, vector<1x1x8x8xbf16>
      %34 = vector.shape_cast %33 : vector<1x1x8x8xbf16> to vector<8x8xbf16>
      %35 = vector.shape_cast %32 : vector<8x8xbf16> to vector<1x1x8x8xbf16>
      tpu.vector_store %arg7[%c0_34, %c0_35, %c0_36, %c0_37], %35 {strides = array<i32>} : memref<1x1x8x8xbf16, #tpu.memory_space<vmem>>, vector<1x1x8x8xbf16>,
    } else {
    }
    return
  }
  func.func @transform_0(%arg0: i32, %arg1: i32, %arg2: i32) -> (i32, i32, i32, i32) {
    %c2_i32 = arith.constant 2 : i32
    %0 = arith.muli %c2_i32, %arg1 : i32
    %1 = arith.addi %0, %arg2 : i32
    %c0_i32 = arith.constant 0 : i32
    %c0_i32_0 = arith.constant 0 : i32
    %c0_i32_1 = arith.constant 0 : i32
    return %arg0, %1, %c0_i32, %c0_i32_0 : i32, i32, i32, i32
  }
  func.func @transform_1(%arg0: i32, %arg1: i32, %arg2: i32) -> (i32, i32, i32, i32) {
    %c2_i32 = arith.constant 2 : i32
    %0 = arith.muli %c2_i32, %arg1 : i32
    %1 = arith.addi %0, %arg2 : i32
    %c0_i32 = arith.constant 0 : i32
    %c0_i32_0 = arith.constant 0 : i32
    %c0_i32_1 = arith.constant 0 : i32
    return %arg0, %1, %c0_i32, %c0_i32_0 : i32, i32, i32, i32
  }
  func.func @transform_2(%arg0: i32, %arg1: i32, %arg2: i32) -> (i32, i32, i32, i32) {
    %c0_i32 = arith.constant 0 : i32
    %c0_i32_0 = arith.constant 0 : i32
    %c0_i32_1 = arith.constant 0 : i32
    %c0_i32_2 = arith.constant 0 : i32
    return %arg2, %c0_i32, %c0_i32_0, %c0_i32_1 : i32, i32, i32, i32
  }
  func.func @transform_3(%arg0: i32, %arg1: i32, %arg2: i32) -> (i32, i32) {
    %c0_i32 = arith.constant 0 : i32
    %c0_i32_0 = arith.constant 0 : i32
    %c0_i32_1 = arith.constant 0 : i32
    return %c0_i32, %c0_i32_0 : i32, i32
  }
  func.func @transform_4(%arg0: i32, %arg1: i32, %arg2: i32) -> (i32, i32, i32, i32) {
    %c0_i32 = arith.constant 0 : i32
    %c0_i32_0 = arith.constant 0 : i32
    %c0_i32_1 = arith.constant 0 : i32
    return %arg0, %arg1, %c0_i32, %c0_i32_0 : i32, i32, i32, i32
  }
}

</mosaic_0001>

<bundles_post_ra>
// kernel: bottleneck_forward.6
= control target key start
LH: loop header
LB: loop body
LE: loop exit
PB: predicated region body
PF: predicated region fallthrough
CT: control target
= control target key end

     0   :  { %vm104_vm0 = vcmask 1041408   ;;  %vm79_vm1 = vcmask 31744   ;;  %vm269_vm2 = vcmask 257024   ;;  %s500_s1 = inlined_call_operand.vmem [shape: bf16[4,32], index: 1, kind: input, shape index: {}]   ;;  %s501_s0 = inlined_call_operand.vmem [shape: bf16[128,4], index: 0, kind: input, shape index: {}]   ;;  %s502_s2 = inlined_call_operand.vmem [shape: f32[1,32], index: 2, kind: input, shape index: {}]   ;;  %s503_s3 = inlined_call_operand.vmem [shape: bf16[128,32], index: 3, kind: output, shape index: {}]  }
   0x1   :  { %v31_v0 = vld [vmem:[%s500_s1] sm:$0x3]  ;;  %v372_v4 = vld [vmem:[%s501_s0 + $0x8] sm:$0xff]   ;;  %v374_v6 = vld [vmem:[%s501_s0 + $0x10] sm:$0xff]  }
   0x2   :  { %368 = vmatprep.subr.msk.bf16.mxu0 %vm104_vm0, %v31_v0  ;;  %369 = vmatprep.subr.msk.bf16.mxu1 %vm104_vm0, %v31_v0  ;;  %v106_v1 = vsel %vm104_vm0, %v31_v0, 0  ;;  %v370_v2 = vld [vmem:[%s501_s0] sm:$0xff]   ;;  %v373_v5 = vld [vmem:[%s501_s0 + $0x28] sm:$0xff]   ;;  %v375_v7 = vld [vmem:[%s501_s0 + $0x30] sm:$0xff]  }
   0x3   :  { %349 = vmatpush3.bf16.msra.mxu0 %v106_v1  ;;  %367 = vmatpush3.bf16.msra.mxu1 %v106_v1  ;;  %v371_v3 = vld [vmem:[%s501_s0 + $0x20] sm:$0xff]   ;;  %v376_v8 = vld [vmem:[%s501_s0 + $0x18] sm:$0xff]  }
   0x4   :  { %350 = vmatprep.mubr.msk.bf16.mxu0 %vm79_vm1, %v370_v2  ;;  %358 = vmatprep.mubr.msk.bf16.mxu1 %vm79_vm1, %v371_v3  ;;  %v377_v9 = vld [vmem:[%s501_s0 + $0x38] sm:$0xff]   ;;  %v290_v10 = vld [vmem:[%s502_s2] ss:$0 sm:$0xff] }
   0x6   :  { %351 = vmatmul.mubr.msk.bf16.vlgmr.msra.gmra.mrb[0].mxu0 %vm79_vm1, %v372_v4  ;;  %359 = vmatmul.mubr.msk.bf16.vlgmr.msra.gmra.mrb[0].mxu1 %vm79_vm1, %v373_v5 }
   0x7   :  { %354 = vmatprep.mubr.msk.bf16.mxu0 %vm79_vm1, %v374_v6  ;;  %362 = vmatprep.mubr.msk.bf16.mxu1 %vm79_vm1, %v375_v7 }
   0xe   :  { %355 = vmatmul.mubr.msk.bf16.gmra.mrb[4].mxu0 %vm79_vm1, %v376_v8  ;;  %363 = vmatmul.mubr.msk.bf16.gmra.mrb[4].mxu1 %vm79_vm1, %v377_v9 }
  0xd9   :  { %v352_v11 = vpop.f32.mrb[0].mxu0  ;;  %v360_v13 = vpop.f32.mrb[0].mxu1 }
  0xda   :  { %v151_v12 = vadd.f32 %v352_v11, %v290_v10  ;;  %v142_v14 = vpop.f32.mrb[1].mxu0  ;;  %v183_v15 = vadd.f32 %v360_v13, %v290_v10  ;;  %v174_v17 = vpop.f32.mrb[1].mxu1 }
  0xdb   :  { %v143_v16 = vadd.f32 %v290_v10, %v142_v14  ;;  %v353_v18 = vpop.f32.mrb[2].mxu0  ;;  %v175_v20 = vadd.f32 %v290_v10, %v174_v17  ;;  %v361_v22 = vpop.f32.mrb[2].mxu1 }
  0xdc   :  { %v325_v19 = vpack.c.bf16 %v151_v12, %v151_v12  ;;  %v154_v21 = vadd.f32 %v353_v18, %v290_v10  ;;  %v145_v23 = vpop.f32.mrb[3].mxu0  ;;  %v333_v24 = vpack.c.bf16 %v183_v15, %v183_v15  ;;  %v186_v26 = vadd.f32 %v361_v22, %v290_v10  ;;  %v177_v28 = vpop.f32.mrb[3].mxu1 }
  0xdd   :  { %v323_v25 = vpack.c.bf16 %v143_v16, %v143_v16  ;;  %v146_v27 = vadd.f32 %v290_v10, %v145_v23  ;;  %v331_v29 = vpack.c.bf16 %v175_v20, %v175_v20  ;;  %v178_v31 = vadd.f32 %v290_v10, %v177_v28 }
  0xde   :  { %272 = vst.msk [vmem:[%s503_s3 + $0x8] sm:$0xf] %vm269_vm2, %v325_v19  ;;  %v326_v30 = vpack.c.bf16 %v154_v21, %v154_v21  ;;  %280 = vst.msk [vmem:[%s503_s3 + $0x28] sm:$0xf] %vm269_vm2, %v333_v24  ;;  %v334_v32 = vpack.c.bf16 %v186_v26, %v186_v26 }
  0xdf   :  { %270 = vst.msk [vmem:[%s503_s3] sm:$0xf] %vm269_vm2, %v323_v25  ;;  %v324_v33 = vpack.c.bf16 %v146_v27, %v146_v27  ;;  %278 = vst.msk [vmem:[%s503_s3 + $0x20] sm:$0xf] %vm269_vm2, %v331_v29  ;;  %v332_v34 = vpack.c.bf16 %v178_v31, %v178_v31 }
  0xe0   :  { %273 = vst.msk [vmem:[%s503_s3 + $0xc] sm:$0xf] %vm269_vm2, %v326_v30  ;;  %281 = vst.msk [vmem:[%s503_s3 + $0x2c] sm:$0xf] %vm269_vm2, %v334_v32 }
  0xe1   :  { %271 = vst.msk [vmem:[%s503_s3 + $0x4] sm:$0xf] %vm269_vm2, %v324_v33  ;;  %v356_v35 = vpop.f32.mrb[4].mxu0  ;;  %279 = vst.msk [vmem:[%s503_s3 + $0x24] sm:$0xf] %vm269_vm2, %v332_v34  ;;  %v364_v37 = vpop.f32.mrb[4].mxu1 }
  0xe2   :  { %v167_v36 = vadd.f32 %v356_v35, %v290_v10  ;;  %v158_v38 = vpop.f32.mrb[5].mxu0  ;;  %v199_v39 = vadd.f32 %v364_v37, %v290_v10  ;;  %v190_v41 = vpop.f32.mrb[5].mxu1 }
  0xe3   :  { %v159_v40 = vadd.f32 %v290_v10, %v158_v38  ;;  %v357_v42 = vpop.f32.mrb[6].mxu0  ;;  %v191_v44 = vadd.f32 %v290_v10, %v190_v41  ;;  %v365_v46 = vpop.f32.mrb[6].mxu1 }
  0xe4   :  { %v329_v43 = vpack.c.bf16 %v167_v36, %v167_v36  ;;  %v170_v45 = vadd.f32 %v357_v42, %v290_v10  ;;  %v161_v47 = vpop.f32.mrb[7].mxu0  ;;  %v337_v48 = vpack.c.bf16 %v199_v39, %v199_v39  ;;  %v202_v50 = vadd.f32 %v365_v46, %v290_v10  ;;  %v193_v52 = vpop.f32.mrb[7].mxu1 }
  0xe5   :  { %v327_v49 = vpack.c.bf16 %v159_v40, %v159_v40  ;;  %v162_v51 = vadd.f32 %v290_v10, %v161_v47  ;;  %v335_v53 = vpack.c.bf16 %v191_v44, %v191_v44  ;;  %v194_v55 = vadd.f32 %v290_v10, %v193_v52 }
  0xe6   :  { %276 = vst.msk [vmem:[%s503_s3 + $0x18] sm:$0xf] %vm269_vm2, %v329_v43  ;;  %v330_v54 = vpack.c.bf16 %v170_v45, %v170_v45  ;;  %284 = vst.msk [vmem:[%s503_s3 + $0x38] sm:$0xf] %vm269_vm2, %v337_v48  ;;  %v338_v56 = vpack.c.bf16 %v202_v50, %v202_v50 }
  0xe7   :  { %274 = vst.msk [vmem:[%s503_s3 + $0x10] sm:$0xf] %vm269_vm2, %v327_v49  ;;  %v328_v57 = vpack.c.bf16 %v162_v51, %v162_v51  ;;  %282 = vst.msk [vmem:[%s503_s3 + $0x30] sm:$0xf] %vm269_vm2, %v335_v53  ;;  %v336_v58 = vpack.c.bf16 %v194_v55, %v194_v55 }
  0xe8   :  { %277 = vst.msk [vmem:[%s503_s3 + $0x1c] sm:$0xf] %vm269_vm2, %v330_v54  ;;  %285 = vst.msk [vmem:[%s503_s3 + $0x3c] sm:$0xf] %vm269_vm2, %v338_v56 }
  0xe9   :  { %275 = vst.msk [vmem:[%s503_s3 + $0x14] sm:$0xf] %vm269_vm2, %v328_v57  ;;  %283 = vst.msk [vmem:[%s503_s3 + $0x34] sm:$0xf] %vm269_vm2, %v336_v58 }

// kernel: bottleneck_forward.4
= control target key start
LH: loop header
LB: loop body
LE: loop exit
PB: predicated region body
PF: predicated region fallthrough
CT: control target
= control target key end

     0   :  { %s1104_s12 = smov 0   ;;  %s1106_s13 = smov 0   ;;  %s1284_s0 = inlined_call_operand.vmem [shape: bf16[512,4], index: 0, kind: input, shape index: {}]   ;;  %s1285_s1 = inlined_call_operand.vmem [shape: bf16[4,8], index: 1, kind: input, shape index: {}]   ;;  %s1286_s2 = inlined_call_operand.vmem [shape: f32[1,8], index: 2, kind: input, shape index: {}]   ;;  %s1287_s3 = inlined_call_operand.vmem [shape: bf16[512,8], index: 3, kind: output, shape index: {}]  }
   0x1   :  { %s1108_s14 = smov 0  }
   0x2 LB: > { %s25_s15 = sadd.s32 1, %s1078_s13  ;;  %p861_p0 = scmp.ge.s32.totalorder %s1082_s14, 1  ;;  %s1082_s14 = sphi %s1108_s14, %s13_s14   ;;  %s1078_s13 = sphi %s1106_s13, %s1289_s13   ;;  %s1074_s12 = sphi %s1104_s12, %s1288_s12  }
   0x3   : > { %p27_p1 = scmp.ge.s32.totalorder %s25_s15, 2  ;;  %p169_p2 = scmp.lt.s32.totalorder %s1082_s14, 3 }
   0x5   : > { %s1291_s15 = smov (%p27_p1, %s25_s15), 0  ;;  %p170_p3 = pnand %p861_p0, %p169_p2 }
   0x6   : > { %v258_v0 = vld [vmem:[%s1285_s1] sm:$0x3] (!%p170_p3)  ;;  %vm395_vm0 = vcmask (!%p170_p3), 1041408   ;;  %s862_s18 = sshll.u32 (!%p170_p3), %s1074_s12, 5  ;;  %vm346_vm1 = vcmask (!%p170_p3), 31744   ;;  %vm720_vm2 = vcmask (!%p170_p3), 60416  }
   0x7   : > { %173 = sbr.rel (%p170_p3) target bundleno = 266 (0x10a), region = 32  ;;  %1018 = vmatprep.subr.msk.bf16.mxu0 (!%p170_p3), %vm395_vm0, %v258_v0  ;;  %1019 = vmatprep.subr.msk.bf16.mxu1 (!%p170_p3), %vm395_vm0, %v258_v0  ;;  %v397_v1 = vsel (!%p170_p3), %vm395_vm0, %v258_v0, 0  ;;  %p204_p4 = scmp.lt.s32.totalorder (!%p170_p3), %s862_s18, 63  ;;  %v1170_v18 = vld [vmem:[%s1286_s2] ss:$0 sm:$0xff] (!%p170_p3) }
   0x8   : > { %983 = vmatpush3.bf16.msra.mxu0 (!%p170_p3), %v397_v1  ;;  %1017 = vmatpush3.bf16.msra.mxu1 (!%p170_p3), %v397_v1 }
   0xe   : > { %s1293_s18 = smov (!%p204_p4, %s862_s18), 63 }
   0xf   : > { %s863_s19 = sshll.u32 %s1293_s18, 2 }
  0x10   : > { %s1133_s22 = scalar_lea.vmem %s1284_s0, %s863_s19  ;;  %s1182_s27 = scalar_lea.vmem %s1287_s3, %s863_s19 }
  0x11   : > { %v1044_v2 = vld [vmem:[%s1133_s22] sm:$0xff]   ;;  %v1046_v4 = vld [vmem:[%s1133_s22 + $0x8] sm:$0xff]   ;;  %v1048_v6 = vld [vmem:[%s1133_s22 + $0x10] sm:$0xff]  }
  0x12   : > { %v1045_v3 = vld [vmem:[%s1133_s22 + $0x40] sm:$0xff]   ;;  %984 = vmatprep.mubr.msk.bf16.mxu0 %vm346_vm1, %v1044_v2  ;;  %v1047_v5 = vld [vmem:[%s1133_s22 + $0x48] sm:$0xff]   ;;  %v1049_v7 = vld [vmem:[%s1133_s22 + $0x50] sm:$0xff]  }
  0x13   : > { %1000 = vmatprep.mubr.msk.bf16.mxu1 %vm346_vm1, %v1045_v3  ;;  %985 = vmatmul.mubr.msk.bf16.vlgmr.msra.gmra.mrb[0].mxu0 %vm346_vm1, %v1046_v4  ;;  %v1050_v8 = vld [vmem:[%s1133_s22 + $0x18] sm:$0xff]   ;;  %v1052_v10 = vld [vmem:[%s1133_s22 + $0x20] sm:$0xff]   ;;  %v1054_v12 = vld [vmem:[%s1133_s22 + $0x28] sm:$0xff]  }
  0x14   : > { %1001 = vmatmul.mubr.msk.bf16.vlgmr.msra.gmra.mrb[0].mxu1 %vm346_vm1, %v1047_v5  ;;  %988 = vmatprep.mubr.msk.bf16.mxu0 %vm346_vm1, %v1048_v6  ;;  %v1051_v9 = vld [vmem:[%s1133_s22 + $0x58] sm:$0xff]   ;;  %v1053_v11 = vld [vmem:[%s1133_s22 + $0x60] sm:$0xff]   ;;  %v1055_v13 = vld [vmem:[%s1133_s22 + $0x68] sm:$0xff]  }
  0x15   : > { %1004 = vmatprep.mubr.msk.bf16.mxu1 %vm346_vm1, %v1049_v7  ;;  %v1056_v14 = vld [vmem:[%s1133_s22 + $0x30] sm:$0xff]   ;;  %v1058_v16 = vld [vmem:[%s1133_s22 + $0x38] sm:$0xff]  }
  0x16   : > { %v1057_v15 = vld [vmem:[%s1133_s22 + $0x70] sm:$0xff]   ;;  %v1059_v17 = vld [vmem:[%s1133_s22 + $0x78] sm:$0xff]  }
  0x1b   : > { %989 = vmatmul.mubr.msk.bf16.gmra.mrb[4].mxu0 %vm346_vm1, %v1050_v8 }
  0x1c   : > { %1005 = vmatmul.mubr.msk.bf16.gmra.mrb[4].mxu1 %vm346_vm1, %v1051_v9  ;;  %992 = vmatprep.mubr.msk.bf16.mxu0 %vm346_vm1, %v1052_v10 }
  0x1d   : > { %1008 = vmatprep.mubr.msk.bf16.mxu1 %vm346_vm1, %v1053_v11 }
  0x23   : > { %993 = vmatmul.mubr.msk.bf16.gmra.mrb[8].mxu0 %vm346_vm1, %v1054_v12 }
  0x24   : > { %1009 = vmatmul.mubr.msk.bf16.gmra.mrb[8].mxu1 %vm346_vm1, %v1055_v13  ;;  %996 = vmatprep.mubr.msk.bf16.mxu0 %vm346_vm1, %v1056_v14 }
  0x25   : > { %1012 = vmatprep.mubr.msk.bf16.mxu1 %vm346_vm1, %v1057_v15 }
  0x2b   : > { %997 = vmatmul.mubr.msk.bf16.gmra.mrb[12].mxu0 %vm346_vm1, %v1058_v16 }
  0x2c   : > { %1013 = vmatmul.mubr.msk.bf16.gmra.mrb[12].mxu1 %vm346_vm1, %v1059_v17 }
  0xe6   : > { %v986_v19 = vpop.f32.mrb[0].mxu0 }
  0xe7   : > { %v442_v20 = vadd.f32 %v986_v19, %v1170_v18  ;;  %v1002_v21 = vpop.f32.mrb[0].mxu1  ;;  %v433_v22 = vpop.f32.mrb[1].mxu0 }
  0xe8   : > { %v506_v23 = vadd.f32 %v1002_v21, %v1170_v18  ;;  %v434_v24 = vadd.f32 %v1170_v18, %v433_v22  ;;  %v497_v25 = vpop.f32.mrb[1].mxu1  ;;  %v987_v26 = vpop.f32.mrb[2].mxu0 }
  0xe9   : > { %v562_v27 = vmax.f32 %v442_v20, 0.0  ;;  %v498_v28 = vadd.f32 %v1170_v18, %v497_v25  ;;  %v445_v29 = vadd.f32 %v987_v26, %v1170_v18  ;;  %v1003_v30 = vpop.f32.mrb[2].mxu1  ;;  %v436_v31 = vpop.f32.mrb[3].mxu0 }
  0xea   : > { %v578_v32 = vmax.f32 %v506_v23, 0.0  ;;  %v560_v33 = vmax.f32 %v434_v24, 0.0  ;;  %v509_v34 = vadd.f32 %v1003_v30, %v1170_v18  ;;  %v437_v35 = vadd.f32 %v1170_v18, %v436_v31  ;;  %v500_v36 = vpop.f32.mrb[3].mxu1 }
  0xeb   : > { %v935_v37 = vpack.c.bf16 %v562_v27, %v562_v27  ;;  %v576_v38 = vmax.f32 %v498_v28, 0.0  ;;  %v563_v39 = vmax.f32 %v445_v29, 0.0  ;;  %v501_v40 = vadd.f32 %v1170_v18, %v500_v36 }
  0xec   : > { %v951_v41 = vpack.c.bf16 %v578_v32, %v578_v32  ;;  %v933_v42 = vpack.c.bf16 %v560_v33, %v560_v33  ;;  %v579_v43 = vmax.f32 %v509_v34, 0.0  ;;  %v561_v44 = vmax.f32 %v437_v35, 0.0 }
  0xed   : > { %723 = vst.msk [vmem:[%s1182_s27 + $0x8] sm:$0xf] %vm720_vm2, %v935_v37  ;;  %v949_v45 = vpack.c.bf16 %v576_v38, %v576_v38  ;;  %v936_v46 = vpack.c.bf16 %v563_v39, %v563_v39  ;;  %v577_v47 = vmax.f32 %v501_v40, 0.0 }
  0xee   : > { %739 = vst.msk [vmem:[%s1182_s27 + $0x48] sm:$0xf] %vm720_vm2, %v951_v41  ;;  %721 = vst.msk [vmem:[%s1182_s27] sm:$0xf] %vm720_vm2, %v933_v42  ;;  %v952_v48 = vpack.c.bf16 %v579_v43, %v579_v43  ;;  %v934_v49 = vpack.c.bf16 %v561_v44, %v561_v44  ;;  %v990_v50 = vpop.f32.mrb[4].mxu0 }
  0xef   : > { %737 = vst.msk [vmem:[%s1182_s27 + $0x40] sm:$0xf] %vm720_vm2, %v949_v45  ;;  %724 = vst.msk [vmem:[%s1182_s27 + $0xc] sm:$0xf] %vm720_vm2, %v936_v46  ;;  %v950_v51 = vpack.c.bf16 %v577_v47, %v577_v47  ;;  %v458_v52 = vadd.f32 %v990_v50, %v1170_v18  ;;  %v1006_v53 = vpop.f32.mrb[4].mxu1  ;;  %v449_v54 = vpop.f32.mrb[5].mxu0 }
  0xf0   : > { %740 = vst.msk [vmem:[%s1182_s27 + $0x4c] sm:$0xf] %vm720_vm2, %v952_v48  ;;  %722 = vst.msk [vmem:[%s1182_s27 + $0x4] sm:$0xf] %vm720_vm2, %v934_v49  ;;  %v522_v55 = vadd.f32 %v1006_v53, %v1170_v18  ;;  %v450_v56 = vadd.f32 %v1170_v18, %v449_v54  ;;  %v513_v57 = vpop.f32.mrb[5].mxu1  ;;  %v991_v58 = vpop.f32.mrb[6].mxu0 }
  0xf1   : > { %738 = vst.msk [vmem:[%s1182_s27 + $0x44] sm:$0xf] %vm720_vm2, %v950_v51  ;;  %v566_v59 = vmax.f32 %v458_v52, 0.0  ;;  %v514_v60 = vadd.f32 %v1170_v18, %v513_v57  ;;  %v461_v61 = vadd.f32 %v991_v58, %v1170_v18  ;;  %v1007_v62 = vpop.f32.mrb[6].mxu1  ;;  %v452_v63 = vpop.f32.mrb[7].mxu0 }
  0xf2   : > { %v582_v0 = vmax.f32 %v522_v55, 0.0  ;;  %v564_v1 = vmax.f32 %v450_v56, 0.0  ;;  %v525_v2 = vadd.f32 %v1007_v62, %v1170_v18  ;;  %v453_v3 = vadd.f32 %v1170_v18, %v452_v63  ;;  %v516_v4 = vpop.f32.mrb[7].mxu1 }
  0xf3   : > { %v939_v5 = vpack.c.bf16 %v566_v59, %v566_v59  ;;  %v580_v6 = vmax.f32 %v514_v60, 0.0  ;;  %v567_v7 = vmax.f32 %v461_v61, 0.0  ;;  %v517_v8 = vadd.f32 %v1170_v18, %v516_v4 }
  0xf4   : > { %v955_v9 = vpack.c.bf16 %v582_v0, %v582_v0  ;;  %v937_v10 = vpack.c.bf16 %v564_v1, %v564_v1  ;;  %v583_v11 = vmax.f32 %v525_v2, 0.0  ;;  %v565_v12 = vmax.f32 %v453_v3, 0.0 }
  0xf5   : > { %727 = vst.msk [vmem:[%s1182_s27 + $0x18] sm:$0xf] %vm720_vm2, %v939_v5  ;;  %v953_v13 = vpack.c.bf16 %v580_v6, %v580_v6  ;;  %v940_v14 = vpack.c.bf16 %v567_v7, %v567_v7  ;;  %v581_v15 = vmax.f32 %v517_v8, 0.0 }
  0xf6   : > { %743 = vst.msk [vmem:[%s1182_s27 + $0x58] sm:$0xf] %vm720_vm2, %v955_v9  ;;  %725 = vst.msk [vmem:[%s1182_s27 + $0x10] sm:$0xf] %vm720_vm2, %v937_v10  ;;  %v956_v16 = vpack.c.bf16 %v583_v11, %v583_v11  ;;  %v938_v17 = vpack.c.bf16 %v565_v12, %v565_v12  ;;  %v994_v19 = vpop.f32.mrb[8].mxu0 }
  0xf7   : > { %741 = vst.msk [vmem:[%s1182_s27 + $0x50] sm:$0xf] %vm720_vm2, %v953_v13  ;;  %728 = vst.msk [vmem:[%s1182_s27 + $0x1c] sm:$0xf] %vm720_vm2, %v940_v14  ;;  %v954_v20 = vpack.c.bf16 %v581_v15, %v581_v15  ;;  %v474_v21 = vadd.f32 %v994_v19, %v1170_v18  ;;  %v1010_v22 = vpop.f32.mrb[8].mxu1  ;;  %v465_v23 = vpop.f32.mrb[9].mxu0 }
  0xf8   : > { %744 = vst.msk [vmem:[%s1182_s27 + $0x5c] sm:$0xf] %vm720_vm2, %v956_v16  ;;  %726 = vst.msk [vmem:[%s1182_s27 + $0x14] sm:$0xf] %vm720_vm2, %v938_v17  ;;  %v538_v24 = vadd.f32 %v1010_v22, %v1170_v18  ;;  %v466_v25 = vadd.f32 %v1170_v18, %v465_v23  ;;  %v529_v26 = vpop.f32.mrb[9].mxu1  ;;  %v995_v27 = vpop.f32.mrb[10].mxu0 }
  0xf9   : > { %742 = vst.msk [vmem:[%s1182_s27 + $0x54] sm:$0xf] %vm720_vm2, %v954_v20  ;;  %v570_v28 = vmax.f32 %v474_v21, 0.0  ;;  %v530_v29 = vadd.f32 %v1170_v18, %v529_v26  ;;  %v477_v30 = vadd.f32 %v995_v27, %v1170_v18  ;;  %v1011_v31 = vpop.f32.mrb[10].mxu1  ;;  %v468_v32 = vpop.f32.mrb[11].mxu0 }
  0xfa   : > { %v586_v33 = vmax.f32 %v538_v24, 0.0  ;;  %v568_v34 = vmax.f32 %v466_v25, 0.0  ;;  %v541_v35 = vadd.f32 %v1011_v31, %v1170_v18  ;;  %v469_v36 = vadd.f32 %v1170_v18, %v468_v32  ;;  %v532_v37 = vpop.f32.mrb[11].mxu1 }
  0xfb   : > { %v943_v38 = vpack.c.bf16 %v570_v28, %v570_v28  ;;  %v584_v39 = vmax.f32 %v530_v29, 0.0  ;;  %v571_v40 = vmax.f32 %v477_v30, 0.0  ;;  %v533_v41 = vadd.f32 %v1170_v18, %v532_v37 }
  0xfc   : > { %v959_v42 = vpack.c.bf16 %v586_v33, %v586_v33  ;;  %v941_v43 = vpack.c.bf16 %v568_v34, %v568_v34  ;;  %v587_v44 = vmax.f32 %v541_v35, 0.0  ;;  %v569_v45 = vmax.f32 %v469_v36, 0.0 }
  0xfd   : > { %731 = vst.msk [vmem:[%s1182_s27 + $0x28] sm:$0xf] %vm720_vm2, %v943_v38  ;;  %v957_v46 = vpack.c.bf16 %v584_v39, %v584_v39  ;;  %v944_v47 = vpack.c.bf16 %v571_v40, %v571_v40  ;;  %v585_v48 = vmax.f32 %v533_v41, 0.0 }
  0xfe   : > { %747 = vst.msk [vmem:[%s1182_s27 + $0x68] sm:$0xf] %vm720_vm2, %v959_v42  ;;  %729 = vst.msk [vmem:[%s1182_s27 + $0x20] sm:$0xf] %vm720_vm2, %v941_v43  ;;  %v960_v49 = vpack.c.bf16 %v587_v44, %v587_v44  ;;  %v942_v50 = vpack.c.bf16 %v569_v45, %v569_v45  ;;  %v998_v51 = vpop.f32.mrb[12].mxu0 }
  0xff   : > { %745 = vst.msk [vmem:[%s1182_s27 + $0x60] sm:$0xf] %vm720_vm2, %v957_v46  ;;  %732 = vst.msk [vmem:[%s1182_s27 + $0x2c] sm:$0xf] %vm720_vm2, %v944_v47  ;;  %v958_v52 = vpack.c.bf16 %v585_v48, %v585_v48  ;;  %v490_v53 = vadd.f32 %v998_v51, %v1170_v18  ;;  %v1014_v54 = vpop.f32.mrb[12].mxu1  ;;  %v481_v55 = vpop.f32.mrb[13].mxu0 }
 0x100   : > { %748 = vst.msk [vmem:[%s1182_s27 + $0x6c] sm:$0xf] %vm720_vm2, %v960_v49  ;;  %730 = vst.msk [vmem:[%s1182_s27 + $0x24] sm:$0xf] %vm720_vm2, %v942_v50  ;;  %v554_v56 = vadd.f32 %v1014_v54, %v1170_v18  ;;  %v482_v57 = vadd.f32 %v1170_v18, %v481_v55  ;;  %v545_v58 = vpop.f32.mrb[13].mxu1  ;;  %v999_v59 = vpop.f32.mrb[14].mxu0 }
 0x101   : > { %746 = vst.msk [vmem:[%s1182_s27 + $0x64] sm:$0xf] %vm720_vm2, %v958_v52  ;;  %v574_v60 = vmax.f32 %v490_v53, 0.0  ;;  %v546_v61 = vadd.f32 %v1170_v18, %v545_v58  ;;  %v493_v62 = vadd.f32 %v999_v59, %v1170_v18  ;;  %v1015_v63 = vpop.f32.mrb[14].mxu1  ;;  %v484_v0 = vpop.f32.mrb[15].mxu0 }
 0x102   : > { %v590_v1 = vmax.f32 %v554_v56, 0.0  ;;  %v572_v2 = vmax.f32 %v482_v57, 0.0  ;;  %v557_v3 = vadd.f32 %v1015_v63, %v1170_v18  ;;  %v485_v4 = vadd.f32 %v1170_v18, %v484_v0  ;;  %v548_v5 = vpop.f32.mrb[15].mxu1 }
 0x103   : > { %v947_v6 = vpack.c.bf16 %v574_v60, %v574_v60  ;;  %v588_v7 = vmax.f32 %v546_v61, 0.0  ;;  %v575_v8 = vmax.f32 %v493_v62, 0.0  ;;  %v549_v9 = vadd.f32 %v1170_v18, %v548_v5 }
 0x104   : > { %v963_v10 = vpack.c.bf16 %v590_v1, %v590_v1  ;;  %v945_v11 = vpack.c.bf16 %v572_v2, %v572_v2  ;;  %v591_v12 = vmax.f32 %v557_v3, 0.0  ;;  %v573_v13 = vmax.f32 %v485_v4, 0.0 }
 0x105   : > { %735 = vst.msk [vmem:[%s1182_s27 + $0x38] sm:$0xf] %vm720_vm2, %v947_v6  ;;  %v961_v14 = vpack.c.bf16 %v588_v7, %v588_v7  ;;  %v948_v15 = vpack.c.bf16 %v575_v8, %v575_v8  ;;  %v589_v16 = vmax.f32 %v549_v9, 0.0 }
 0x106   : > { %751 = vst.msk [vmem:[%s1182_s27 + $0x78] sm:$0xf] %vm720_vm2, %v963_v10  ;;  %733 = vst.msk [vmem:[%s1182_s27 + $0x30] sm:$0xf] %vm720_vm2, %v945_v11  ;;  %v964_v17 = vpack.c.bf16 %v591_v12, %v591_v12  ;;  %v946_v19 = vpack.c.bf16 %v573_v13, %v573_v13 }
 0x107   : > { %749 = vst.msk [vmem:[%s1182_s27 + $0x70] sm:$0xf] %vm720_vm2, %v961_v14  ;;  %736 = vst.msk [vmem:[%s1182_s27 + $0x3c] sm:$0xf] %vm720_vm2, %v948_v15  ;;  %v962_v18 = vpack.c.bf16 %v589_v16, %v589_v16 }
 0x108   : > { %752 = vst.msk [vmem:[%s1182_s27 + $0x7c] sm:$0xf] %vm720_vm2, %v964_v17  ;;  %734 = vst.msk [vmem:[%s1182_s27 + $0x34] sm:$0xf] %vm720_vm2, %v946_v19 }
 0x109   : > { %750 = vst.msk [vmem:[%s1182_s27 + $0x74] sm:$0xf] %vm720_vm2, %v962_v18 }
 0x10a PF: > { %s13_s14 = sadd.s32 1, %s1082_s14   ;;  %s1288_s12 = smov %s1078_s13 }
 0x10b   : > { %p10_p5 = scmp.ge.s32.totalorder %s13_s14, 4   ;;  %s1289_s13 = smov %s1291_s15 }
 0x10d   :  { %12 = sbr.rel (!%p10_p5) target bundleno = 2 (0x2), region = 68 }

// kernel: bottleneck_forward.7
= control target key start
LH: loop header
LB: loop body
LE: loop exit
PB: predicated region body
PF: predicated region fallthrough
CT: control target
= control target key end

     0   :  { %vm108_vm0 = vcmask 1043456   ;;  %vm83_vm1 = vcmask 64512   ;;  %s564_s0 = inlined_call_operand.vmem [shape: bf16[128,8], index: 0, kind: input, shape index: {}]   ;;  %s565_s1 = inlined_call_operand.vmem [shape: bf16[8,32], index: 1, kind: input, shape index: {}]   ;;  %s566_s2 = inlined_call_operand.vmem [shape: f32[1,32], index: 2, kind: input, shape index: {}]   ;;  %s567_s3 = inlined_call_operand.vmem [shape: bf16[128,32], index: 3, kind: input, shape index: {}]   ;;  %s568_s4 = inlined_call_operand.hbm [shape: f32[128,32], index: 4, kind: output, shape index: {}]  }
   0x1   :  { %v35_v0 = vld [vmem:[%s565_s1] sm:$0xf]  ;;  %v398_v4 = vld [vmem:[%s564_s0 + $0x8] sm:$0xff]   ;;  %v400_v6 = vld [vmem:[%s564_s0 + $0x10] sm:$0xff]  }
   0x2   :  { %v396_v1 = vld [vmem:[%s564_s0] sm:$0xff]   ;;  %391 = vmatprep.subr.msk.bf16.mxu0 %vm108_vm0, %v35_v0  ;;  %392 = vmatprep.subr.msk.bf16.mxu1 %vm108_vm0, %v35_v0  ;;  %v110_v2 = vsel %vm108_vm0, %v35_v0, 0  ;;  %v399_v5 = vld [vmem:[%s564_s0 + $0x28] sm:$0xff]   ;;  %v401_v7 = vld [vmem:[%s564_s0 + $0x30] sm:$0xff]  }
   0x3   :  { %372 = vmatpush3.bf16.msra.mxu0 %v110_v2  ;;  %390 = vmatpush3.bf16.msra.mxu1 %v110_v2  ;;  %v397_v3 = vld [vmem:[%s564_s0 + $0x20] sm:$0xff]  }
   0x4   :  { %373 = vmatprep.mubr.msk.bf16.mxu0 %vm83_vm1, %v396_v1  ;;  %381 = vmatprep.mubr.msk.bf16.mxu1 %vm83_vm1, %v397_v3 }
   0x6   :  { %374 = vmatmul.mubr.msk.bf16.vlgmr.msra.gmra.mrb[0].mxu0 %vm83_vm1, %v398_v4  ;;  %382 = vmatmul.mubr.msk.bf16.vlgmr.msra.gmra.mrb[0].mxu1 %vm83_vm1, %v399_v5 }
   0x7   :  { %377 = vmatprep.mubr.msk.bf16.mxu0 %vm83_vm1, %v400_v6  ;;  %385 = vmatprep.mubr.msk.bf16.mxu1 %vm83_vm1, %v401_v7 }
   0x8   :  { %9 = vsyncpa [#allocation3], 0  ;;  %v402_v8 = vld [vmem:[%s564_s0 + $0x18] sm:$0xff]   ;;  %v355_v10 = vld [vmem:[%s567_s3 + $0x8] sm:$0xff]   ;;  %vm273_vm2 = vcmask 261120  }
   0x9   :  { %v403_v9 = vld [vmem:[%s564_s0 + $0x38] sm:$0xff]   ;;  %v359_v11 = vld [vmem:[%s567_s3 + $0x28] sm:$0xff]   ;;  %v324_v12 = vld [vmem:[%s567_s3] sm:$0xff]   ;;  %v329_v15 = vunpack.c.l.bf16 %v355_v10  ;;  %v330_v23 = vunpack.c.h.bf16 %v355_v10 }
   0xa   :  { %v503_v13 = vld [vmem:[%s566_s2] ss:$0 sm:$0xff]  ;;  %v345_v17 = vunpack.c.l.bf16 %v359_v11  ;;  %v325_v18 = vunpack.c.l.bf16 %v324_v12  ;;  %v346_v24 = vunpack.c.h.bf16 %v359_v11  ;;  %v326_v29 = vunpack.c.h.bf16 %v324_v12  ;;  %v357_v41 = vld [vmem:[%s567_s3 + $0x18] sm:$0xff]   ;;  %v356_v47 = vld [vmem:[%s567_s3 + $0x10] sm:$0xff]  }
   0xb   :  { %v358_v14 = vld [vmem:[%s567_s3 + $0x20] sm:$0xff]   ;;  %v361_v46 = vld [vmem:[%s567_s3 + $0x38] sm:$0xff]   ;;  %v360_v52 = vld [vmem:[%s567_s3 + $0x30] sm:$0xff]   ;;  %v337_v56 = vunpack.c.l.bf16 %v357_v41  ;;  %v333_v61 = vunpack.c.l.bf16 %v356_v47  ;;  %v338_v3 = vunpack.c.h.bf16 %v357_v41  ;;  %s428_s3 = smov [#allocation2]  }
   0xc   :  { %v341_v22 = vunpack.c.l.bf16 %v358_v14  ;;  %v342_v35 = vunpack.c.h.bf16 %v358_v14  ;;  %v353_v60 = vunpack.c.l.bf16 %v361_v46  ;;  %v349_v2 = vunpack.c.l.bf16 %v360_v52  ;;  %s295_s22 = sshll.u32 %s428_s3, 4  ;;  %s296_s22 = int_to_ptr.vmem [resolvable:$true] %s295_s22 }
   0xd   :  { %s404_s1 = scalar_lea.vmem %s296_s22, 2048  ;;  %p409_p1 = scmp.lt.s32.totalorder %s296_s22, %s296_s22 }
   0xe   :  { %378 = vmatmul.mubr.msk.bf16.gmra.mrb[4].mxu0 %vm83_vm1, %v402_v8  ;;  %386 = vmatmul.mubr.msk.bf16.gmra.mrb[4].mxu1 %vm83_vm1, %v403_v9  ;;  %v354_v8 = vunpack.c.h.bf16 %v361_v46  ;;  %v334_v9 = vunpack.c.h.bf16 %v356_v47  ;;  %p405_p0 = scmp.ne.s32.totalorder %s296_s22, %s404_s1  ;;  %p410_p2 = scmp.lt.s32.totalorder %s404_s1, %s404_s1 }
  0x10   :  { %p411_p3 = por %p410_p2, %p409_p1 }
  0x12   :  { %p412_p4 = pnand %p411_p3, %p405_p0 }
  0xd9   :  { %v375_v16 = vpop.f32.mrb[0].mxu0  ;;  %v383_v20 = vpop.f32.mrb[0].mxu1 }
  0xda   :  { %v155_v19 = vadd.f32 %v375_v16, %v503_v13  ;;  %v146_v21 = vpop.f32.mrb[1].mxu0  ;;  %v187_v25 = vadd.f32 %v383_v20, %v503_v13  ;;  %v178_v27 = vpop.f32.mrb[1].mxu1  ;;  %v350_v16 = vunpack.c.h.bf16 %v360_v52 }
  0xdb   :  { %v147_v26 = vadd.f32 %v503_v13, %v146_v21  ;;  %v376_v28 = vpop.f32.mrb[2].mxu0  ;;  %v179_v31 = vadd.f32 %v503_v13, %v178_v27  ;;  %v384_v33 = vpop.f32.mrb[2].mxu1 }
  0xdc   :  { %v243_v30 = vadd.f32 %v329_v15, %v155_v19  ;;  %v158_v32 = vadd.f32 %v376_v28, %v503_v13  ;;  %v149_v34 = vpop.f32.mrb[3].mxu0  ;;  %v251_v36 = vadd.f32 %v345_v17, %v187_v25  ;;  %v190_v38 = vadd.f32 %v384_v33, %v503_v13  ;;  %v181_v40 = vpop.f32.mrb[3].mxu1 }
  0xdd   :  { %v241_v37 = vadd.f32 %v325_v18, %v147_v26  ;;  %v150_v39 = vadd.f32 %v503_v13, %v149_v34  ;;  %v249_v43 = vadd.f32 %v341_v22, %v179_v31  ;;  %v182_v45 = vadd.f32 %v503_v13, %v181_v40 }
  0xde   :  { %v259_v42 = vmax.f32 %v243_v30, 0.0  ;;  %v244_v44 = vadd.f32 %v330_v23, %v158_v32  ;;  %v267_v48 = vmax.f32 %v251_v36, 0.0  ;;  %v252_v50 = vadd.f32 %v346_v24, %v190_v38 }
  0xdf   :  { %v257_v49 = vmax.f32 %v241_v37, 0.0  ;;  %v242_v51 = vadd.f32 %v326_v29, %v150_v39  ;;  %v265_v53 = vmax.f32 %v249_v43, 0.0  ;;  %v250_v55 = vadd.f32 %v342_v35, %v182_v45 }
  0xe0   :  { %276 = vst.msk [vmem:[#allocation2 + $0x10] sm:$0xff] %vm273_vm2, %v259_v42  ;;  %v260_v54 = vmax.f32 %v244_v44, 0.0  ;;  %284 = vst.msk [vmem:[#allocation2 + $0x50] sm:$0xff] %vm273_vm2, %v267_v48  ;;  %v268_v57 = vmax.f32 %v252_v50, 0.0 }
  0xe1   :  { %274 = vst.msk [vmem:[#allocation2] sm:$0xff] %vm273_vm2, %v257_v49  ;;  %v258_v58 = vmax.f32 %v242_v51, 0.0  ;;  %v379_v59 = vpop.f32.mrb[4].mxu0  ;;  %282 = vst.msk [vmem:[#allocation2 + $0x40] sm:$0xff] %vm273_vm2, %v265_v53  ;;  %v266_v62 = vmax.f32 %v250_v55, 0.0  ;;  %v387_v0 = vpop.f32.mrb[4].mxu1 }
  0xe2   :  { %277 = vst.msk [vmem:[#allocation2 + $0x18] sm:$0xff] %vm273_vm2, %v260_v54  ;;  %v171_v63 = vadd.f32 %v379_v59, %v503_v13  ;;  %v162_v1 = vpop.f32.mrb[5].mxu0  ;;  %285 = vst.msk [vmem:[#allocation2 + $0x58] sm:$0xff] %vm273_vm2, %v268_v57  ;;  %v203_v4 = vadd.f32 %v387_v0, %v503_v13  ;;  %v194_v6 = vpop.f32.mrb[5].mxu1 }
  0xe3   :  { %275 = vst.msk [vmem:[#allocation2 + $0x8] sm:$0xff] %vm273_vm2, %v258_v58  ;;  %v163_v5 = vadd.f32 %v503_v13, %v162_v1  ;;  %v380_v7 = vpop.f32.mrb[6].mxu0  ;;  %283 = vst.msk [vmem:[#allocation2 + $0x48] sm:$0xff] %vm273_vm2, %v266_v62  ;;  %v195_v11 = vadd.f32 %v503_v13, %v194_v6  ;;  %v388_v14 = vpop.f32.mrb[6].mxu1 }
  0xe4   :  { %v247_v10 = vadd.f32 %v337_v56, %v171_v63  ;;  %v174_v12 = vadd.f32 %v380_v7, %v503_v13  ;;  %v165_v15 = vpop.f32.mrb[7].mxu0  ;;  %v255_v17 = vadd.f32 %v353_v60, %v203_v4  ;;  %v206_v19 = vadd.f32 %v388_v14, %v503_v13  ;;  %v197_v21 = vpop.f32.mrb[7].mxu1 }
  0xe5   :  { %v245_v18 = vadd.f32 %v333_v61, %v163_v5  ;;  %v166_v20 = vadd.f32 %v503_v13, %v165_v15  ;;  %v253_v23 = vadd.f32 %v349_v2, %v195_v11  ;;  %v198_v25 = vadd.f32 %v503_v13, %v197_v21 }
  0xe6   :  { %v263_v22 = vmax.f32 %v247_v10, 0.0  ;;  %v248_v24 = vadd.f32 %v338_v3, %v174_v12  ;;  %v271_v26 = vmax.f32 %v255_v17, 0.0  ;;  %v256_v28 = vadd.f32 %v354_v8, %v206_v19 }
  0xe7   :  { %v261_v27 = vmax.f32 %v245_v18, 0.0  ;;  %v246_v29 = vadd.f32 %v334_v9, %v166_v20  ;;  %v269_v30 = vmax.f32 %v253_v23, 0.0  ;;  %v254_v32 = vadd.f32 %v350_v16, %v198_v25 }
  0xe8   :  { %280 = vst.msk [vmem:[#allocation2 + $0x30] sm:$0xff] %vm273_vm2, %v263_v22  ;;  %v264_v31 = vmax.f32 %v248_v24, 0.0  ;;  %288 = vst.msk [vmem:[#allocation2 + $0x70] sm:$0xff] %vm273_vm2, %v271_v26  ;;  %v272_v33 = vmax.f32 %v256_v28, 0.0 }
  0xe9   :  { %278 = vst.msk [vmem:[#allocation2 + $0x20] sm:$0xff] %vm273_vm2, %v261_v27  ;;  %v262_v34 = vmax.f32 %v246_v29, 0.0  ;;  %286 = vst.msk [vmem:[#allocation2 + $0x60] sm:$0xff] %vm273_vm2, %v269_v30  ;;  %v270_v13 = vmax.f32 %v254_v32, 0.0 }
  0xea   :  { %281 = vst.msk [vmem:[#allocation2 + $0x38] sm:$0xff] %vm273_vm2, %v264_v31  ;;  %289 = vst.msk [vmem:[#allocation2 + $0x78] sm:$0xff] %vm273_vm2, %v272_v33 }
  0xeb   :  { %279 = vst.msk [vmem:[#allocation2 + $0x28] sm:$0xff] %vm273_vm2, %v262_v34  ;;  %287 = vst.msk [vmem:[#allocation2 + $0x68] sm:$0xff] %vm273_vm2, %v270_v13 }
  0xec   :  { %415 = shalt.err (!%p412_p4)
}
  0xed   :  { %s416_s25 = scalar_lea.hbm %s568_s4, 2048 }
  0xee   :  { %p417_p5 = scmp.ne.s32.totalorder %s568_s4, %s416_s25  ;;  %p420_p6 = scmp.lt.u32.totalorder %s416_s25, %s568_s4 }
  0xf0   :  { %p422_p7 = pnand %p420_p6, %p417_p5 }
  0xf2   :  { %425 = shalt.err (!%p422_p7)
}
  0xf3   :  { %s429_s30 = smov 128   ;;  %s430_s5 = smov 8  }
  0xf4   :  { %301 = dma.vmem_to_hbm [thread:$0]  %s296_s22, 2048, %s568_s4, [#allocation3], %s429_s30, %s429_s30, %s430_s5  }
  0xf5   :  { %426 = dma.done.wait [#allocation3], 2048  }
  0xf6   :  { %427 = vsyncadd [#allocation3], 4294965248 }
  0xf7   :  { %305 = vsyncpa [#allocation3], 1 }

// kernel: bottleneck_forward.5
= control target key start
LH: loop header
LB: loop body
LE: loop exit
PB: predicated region body
PF: predicated region fallthrough
CT: control target
= control target key end

     0   :  { %s837_s15 = smov 0   ;;  %s839_s16 = smov 0   ;;  %s941_s0 = inlined_call_operand.vmem [shape: bf16[2,18,9,8], index: 0, kind: input, shape index: {}]   ;;  %s942_s1 = inlined_call_operand.vmem [shape: bf16[2,18,9,8], index: 1, kind: input, shape index: {}]   ;;  %s943_s2 = inlined_call_operand.vmem [shape: bf16[3,3,8,8], index: 2, kind: input, shape index: {}]   ;;  %s944_s3 = inlined_call_operand.vmem [shape: f32[1,8], index: 3, kind: input, shape index: {}]   ;;  %s945_s4 = inlined_call_operand.vmem [shape: bf16[2,8,8,8], index: 4, kind: output, shape index: {}]  }
   0x1   :  { %s841_s17 = smov 0   ;;  %s843_s18 = smov 0  }
   0x2   :  { %s845_s19 = smov 0   ;;  %s847_s20 = smov 0  }
   0x3   :  { %s849_s21 = smov 0  }
   0x4 LB: > { %s26_s22 = sadd.s32 1, %s795_s18  ;;  %s29_s23 = sadd.s32 1, %s799_s19  ;;  %s807_s21 = sphi %s849_s21, %s14_s21   ;;  %s803_s20 = sphi %s847_s20, %s955_s20   ;;  %s799_s19 = sphi %s845_s19, %s954_s19   ;;  %s795_s18 = sphi %s843_s18, %s953_s18   ;;  %s791_s17 = sphi %s841_s17, %s952_s17   ;;  %s787_s16 = sphi %s839_s16, %s951_s16   ;;  %s783_s15 = sphi %s837_s15, %s950_s15  }
   0x5   : > { %p27_p0 = scmp.ge.s32.totalorder %s26_s22, 3  ;;  %p646_p1 = scmp.ge.s32.totalorder %s807_s21, 1 }
   0x6   : > { %p231_p2 = scmp.lt.s32.totalorder %s807_s21, 49  ;;  %s33_s24 = sadd.s32 1, %s803_s20 }
   0x7   : > { %s957_s22 = smov (%p27_p0, %s26_s22), 0  ;;  %s959_s23 = smov (!%p27_p0, %s29_s23), %s799_s19 }
   0x8   : > { %p232_p3 = pnand %p646_p1, %p231_p2  ;;  %p31_p4 = scmp.ge.s32.totalorder %s959_s23, 8 }
   0x9   : > { %s647_s25 = sshll.u32 (!%p232_p3), %s787_s16, 1  ;;  %p284_p6 = scmp.lt.s32.totalorder (!%p232_p3), %s791_s17, 1 }
   0xa   : > { %s961_s23 = smov (%p31_p4, %s959_s23), 0  ;;  %s963_s24 = smov (!%p31_p4, %s33_s24), %s803_s20 }
   0xb   : > { %946 = sst [smem:[#allocation3_spill]] %s961_s23  ;;  %p35_p5 = scmp.ge.s32.totalorder %s963_s24, 2 }
   0xc   : > { %235 = sbr.rel (%p232_p3) target bundleno = 277 (0x115), region = 36  ;;  %s283_s26 = sadd.s32 (!%p232_p3), %s783_s15, %s647_s25 }
   0xd   : > { %s965_s24 = smov (%p35_p5, %s963_s24), 0  ;;  %p308_p7 = scmp.lt.s32.totalorder (!%p232_p3), %s783_s15, 2 }
   0xe   : > { %947 = sst [smem:[#allocation4_spill]] %s965_s24  ;;  %p286_p8 = scmp.lt.s32.totalorder (!%p232_p3), %s283_s26, 17 }
   0xf   : > { %p315_p9 = scmp.lt.s32.totalorder (!%p232_p3), %s787_s16, 7  ;;  %p656_p10 = scmp.ne.s32.totalorder (!%p232_p3), %s783_s15, 0 }
  0x13   : > { %s967_s17 = smov (!%p284_p6, %s791_s17), 1  ;;  %s969_s26 = smov (!%p286_p8, %s283_s26), 17 }
  0x14   : > { %s691_s27 = smul.u32 36, %s967_s17  ;;  %s648_s29 = sshll.u32 %s969_s26, 1  ;;  %vm326_vm0 = vcmask (!%p656_p10), 64512   ;;  %v809_v0 = vmov (!%p656_p10), 0.0  }
  0x15   : > { %s309_s28 = scalar_select %p308_p7, %s783_s15, 2 }
  0x16   : > { %s290_s30 = sadd.s32 %s691_s27, %s648_s29  ;;  %s654_s24 = sshll.u32 %s967_s17, 3  ;;  %327 = vst.msk [vmem:[#allocation2] sm:$0xff] (!%p656_p10), %vm326_vm0, %v809_v0 }
  0x17   : > { %s692_s5 = smul.u32 12, %s309_s28  ;;  %s649_s6 = sshll.u32 %s290_s30, 2 }
  0x18   : > { %s891_s9 = scalar_lea.vmem %s941_s0, %s649_s6  ;;  %s305_s12 = scalar_lea.vmem %s942_s1, %s649_s6 }
  0x19   : > { %s312_s25 = scalar_lea.vmem %s943_s2, %s692_s5  ;;  %s971_s16 = smov (!%p315_p9, %s787_s16), 7 }
  0x1a   : > { %s318_s26 = sadd.s32 %s654_s24, %s971_s16  ;;  %325 = sbr.rel (%p656_p10) target bundleno = 33 (0x21), region = 40 }
  0x1b   : > { %s655_s23 = sshll.u32 %s318_s26, 2 }
  0x1c   : > { %s903_s29 = scalar_lea.vmem %s945_s4, %s655_s23 }
  0x21 PF: > { %v657_v1 = vld [vmem:[%s312_s25 + $0x4] sm:$0xf]  ;;  %vm337_vm1 = vcmask 1043456   ;;  %v329_v2 = vld [vmem:[%s312_s25] sm:$0xf]  ;;  %v810_v3 = vmov 0.0  }
  0x22   : > { %673 = vmatprep.subr.bf16.mxu0 %v810_v3  ;;  %v339_v4 = vsel %vm337_vm1, %v657_v1, 0  ;;  %679 = vmatprep.subr.bf16.mxu1 %v810_v3  ;;  %v385_v5 = vsel %vm337_vm1, %v329_v2, 0  ;;  %v330_v6 = vld [vmem:[%s305_s12] sm:$0xf]  ;;  %vm333_vm2 = vcmask 64512   ;;  %vm811_vm3 = vmmov 0  }
  0x23   : > { %674 = vmatpush3.bf16.msra.mxu0 %v339_v4  ;;  %680 = vmatpush3.bf16.msra.mxu1 %v385_v5  ;;  %v328_v7 = vld [vmem:[%s891_s9] sm:$0xf]  ;;  %v660_v8 = vld [vmem:[%s312_s25 + $0x8] sm:$0xf]  ;;  %p663_p11 = scmp.ne.s32.totalorder %s783_s15, 2 }
  0x24   : > { %675 = vmatprep.mubr.msk.bf16.mxu0 %vm811_vm3, %v810_v3  ;;  %681 = vmatprep.mubr.msk.bf16.mxu1 %vm811_vm3, %v810_v3  ;;  %v447_v9 = vsel %vm337_vm1, %v660_v8, 0  ;;  %v752_v10 = vld [vmem:[%s891_s9] sm:$0x1f]   ;;  %vm508_vm4 = vcmask (!%p663_p11), 60416  }
  0x25   : > { %685 = vmatprep.subr.bf16.mxu0 %v810_v3  ;;  %v437_v11 = vshrl.u32 %v752_v10, 16  ;;  %v439_v12 = vshll.u32 %v752_v10, 16  ;;  %v490_v25 = vld [vmem:[#allocation2] sm:$0xff] }
  0x26   : > { %676 = vmatmul.mubr.msk.bf16.vlgmr.msra.gmra.mrb[0].mxu0 %vm333_vm2, %v330_v6  ;;  %682 = vmatmul.mubr.msk.bf16.vlgmr.msra.gmra.mrb[0].mxu1 %vm333_vm2, %v328_v7  ;;  %v664_v32 = vld [vmem:[%s944_s3] ss:$0 sm:$0xff] (!%p663_p11) }
  0x27   : > { %686 = vmatpush3.bf16.msra.mxu0 %v447_v9  ;;  %687 = vmatprep.mubr.msk.bf16.mxu0 %vm811_vm3, %v810_v3  ;;  %v441_v13 = vrot.slane %v439_v12, 1 }
  0x29   : > { %v442_v14 = vor.u32 %v441_v13, %v437_v11 }
  0x2e   : > { %688 = vmatmul.mubr.msk.bf16.vlgmr.msra.gmra.mrb[4].mxu0 %vm333_vm2, %v442_v14 }
  0xf9   : > { %v375_v15 = vpop.f32.mrb[0].mxu0  ;;  %v421_v16 = vpop.f32.mrb[0].mxu1 }
  0xfa   : > { %v677_v17 = vpop.f32.mrb[1].mxu0  ;;  %v422_v18 = vadd.f32 %v421_v16, %v375_v15  ;;  %v683_v19 = vpop.f32.mrb[1].mxu1 }
  0xfb   : > { %v378_v20 = vpop.f32.mrb[2].mxu0  ;;  %v424_v21 = vpop.f32.mrb[2].mxu1 }
  0xfc   : > { %v678_v22 = vpop.f32.mrb[3].mxu0  ;;  %v684_v23 = vpop.f32.mrb[3].mxu1 }
 0x100   : > { %496 = sbr.rel (%p663_p11) target bundleno = 277 (0x115), region = 44 }
 0x101   : > { %v483_v24 = vpop.f32.mrb[4].mxu0 }
 0x102   : > { %v489_v26 = vadd.f32 %v483_v24, %v422_v18  ;;  %v689_v27 = vpop.f32.mrb[5].mxu0 }
 0x103   : > { %v486_v28 = vpop.f32.mrb[6].mxu0 }
 0x104   : > { %v491_v29 = vadd.f32 %v490_v25, %v489_v26  ;;  %v690_v30 = vpop.f32.mrb[7].mxu0 }
 0x106   : > { %492 = vst.msk [vmem:[#allocation2] sm:$0xff] %vm333_vm2, %v491_v29 }
 0x10d   : > { %v497_v31 = vld [vmem:[#allocation2] sm:$0xff] }
 0x10e   : > { %v505_v33 = vadd.f32 %v664_v32, %v497_v31 }
 0x110   : > { %v506_v34 = vmax.f32 %v505_v33, 0.0 }
 0x112   : > { %v507_v35 = vpack.c.bf16 %v506_v34, %v506_v34 }
 0x114   : > { %509 = vst.msk [vmem:[%s903_s29] sm:$0xf] %vm508_vm4, %v507_v35 }
 0x115 PF: > { %s14_s21 = sadd.s32 1, %s807_s21   ;;  %s948_s23 = sld [smem:[#allocation3_spill]] }
 0x116   : > { %p11_p12 = scmp.ge.s32.totalorder %s14_s21, 50   ;;  %s949_s24 = sld [smem:[#allocation4_spill]] }
 0x117   : > { %s950_s15 = smov %s795_s18  ;;  %s951_s16 = smov %s799_s19 }
 0x118   : > { %s952_s17 = smov %s803_s20  ;;  %s953_s18 = smov %s957_s22 }
 0x119   :  { %13 = sbr.rel (!%p11_p12) target bundleno = 4 (0x4), region = 82 }
 0x11b   : > { %s954_s19 = smov %s948_s23 }
 0x11c   : > { %s955_s20 = smov %s949_s24 }

</bundles_post_ra>
